<compile_context>
chip_gen: v6e
topology: v6e:2x2x1
jax: 0.10.0
libtpu: 0.0.40
codegen_flags: <defaults>
</compile_context>

<pallas_src>
import functools

import numpy as np
import jax
import jax.numpy as jnp
from jax.experimental import pallas as pl
from jax.experimental.pallas import tpu as pltpu


def _istft_kernel(xc_ref, wc_ref, einv_ref, or_ref, oi_ref, *,
                  b_tile, n_frames, n_fft, hop):
    """One batch-tile of the inverse STFT.

    xc_ref  : (b_tile * n_frames, 2*n_fft) bf16   [Re | Im] spectrogram frames
    wc_ref  : (2*n_fft, 2*n_fft) bf16             fused (IDFT * window) matrix
    einv_ref: (1, C, hop) f32                     1 / OLA envelope (0 where trimmed)
    or_ref  : (b_tile, C, hop) f32                folded real output
    oi_ref  : (b_tile, C, hop) f32                folded imag output
      C = n_frames + n_fft // hop - 1; (C, hop) row-major-flattens to the
      full (untrimmed) waveform.
    """
    k = n_fft // hop

    # 1) single fused MXU matmul (bf16 in, f32 accumulate):
    #    [Re | Im] @ [[Wr, Wi], [-Wi, Wr]] -> [yr | yi], window already folded in.
    frames = jnp.dot(xc_ref[...], wc_ref[...],
                     preferred_element_type=jnp.float32)          # (M, 2N) f32
    yr = frames[:, :n_fft].reshape(b_tile, n_frames, n_fft)
    yi = frames[:, n_fft:].reshape(b_tile, n_frames, n_fft)

    # 2) overlap-add by folding: sample n = j*hop + r of frame t lands in
    #    output chunk (t + j), offset r.  k shifted VPU adds into the VMEM
    #    output block — no matmuls, no placement tensors.
    or_ref[...] = jnp.zeros_like(or_ref)
    oi_ref[...] = jnp.zeros_like(oi_ref)
    for j in range(k):                      # k = n_fft // hop: small static unroll
        sl = slice(j, j + n_frames)
        or_ref[:, sl, :] += yr[:, :, j * hop:(j + 1) * hop]
        oi_ref[:, sl, :] += yi[:, :, j * hop:(j + 1) * hop]

    # 3) divide by the hann^2 OLA envelope (precomputed inverse; zero outside
    #    the center-trimmed region, which the wrapper slices away).
    einv = einv_ref[...]
    or_ref[...] = or_ref[...] * einv
    oi_ref[...] = oi_ref[...] * einv


def complexi_istft(x, *, n_fft, hop_length, win_length, pad=0):
    """JAX/Pallas equivalent of ComplexiSTFT.forward (length=None => pad unused)."""
    shape = x.shape
    spec = x.reshape((-1,) + shape[-2:])                 # (B, F, T) complex
    B, F, T = spec.shape
    assert F == n_fft, "onesided=False => freq dim must equal n_fft"
    N = n_fft
    hop = hop_length
    assert N % hop == 0, "folded OLA requires n_fft % hop_length == 0"
    # TODO(synk): general hop (n_fft % hop != 0) needs a different OLA fold.
    k = N // hop
    C = T + k - 1
    L_full = C * hop                                     # == N + hop * (T - 1)
    half = N // 2
    L_out = L_full - 2 * half                            # center=True trimming

    # ---------------- constants (host-side, data independent) ---------------
    kk = np.arange(N)
    ang = 2.0 * np.pi * np.outer(kk, kk) / N
    # periodic hann (torch.hann_window default), center-padded to n_fft
    hann = 0.5 * (1.0 - np.cos(2.0 * np.pi * np.arange(win_length) / win_length))
    wpad = np.zeros((N,), np.float64)
    lpad = (N - win_length) // 2
    wpad[lpad:lpad + win_length] = hann
    # inverse DFT ("backward" 1/N norm) with the synthesis window folded in
    wr = (np.cos(ang) / N) * wpad[None, :]
    wi = (np.sin(ang) / N) * wpad[None, :]
    wc = np.block([[wr, wi], [-wi, wr]]).astype(np.float32)   # (2F, 2N)

    # squared-window OLA envelope; invert on the trimmed (valid) region only
    env = np.zeros((L_full,), np.float64)
    for t in range(T):
        env[t * hop:t * hop + N] += wpad * wpad
    valid = env[half:L_full - half]
    assert np.all(valid > 1e-11), "NOLA violated: window envelope has zeros"
    einv = np.zeros((L_full,), np.float64)
    einv[half:L_full - half] = 1.0 / valid
    einv = einv.reshape(1, C, hop).astype(np.float32)

    # ---------------- input prep: (B,F,T) complex -> (B*T, 2F) bf16 ---------
    xt = jnp.transpose(spec, (0, 2, 1))                       # (B, T, F)
    xc = jnp.concatenate([jnp.real(xt), jnp.imag(xt)], axis=-1)   # (B, T, 2F) f32
    # batch tile: target ~256 MXU rows per step, keep >=2 grid steps if possible
    bt = max(1, min(B, 256 // max(T, 1)))
    if bt >= B and B > 1:
        bt = -(-B // 2)
    if (bt * T) % 8 != 0:            # keep block sublane dim tileable
        bt = B
    n_steps = -(-B // bt)
    B_pad = n_steps * bt
    xc = xc.reshape(B * T, 2 * N).astype(jnp.bfloat16)
    if B_pad != B:
        xc = jnp.pad(xc, ((0, (B_pad - B) * T), (0, 0)))

    out_shape = (jax.ShapeDtypeStruct((B_pad, C, hop), jnp.float32),
                 jax.ShapeDtypeStruct((B_pad, C, hop), jnp.float32))

    grid_spec = pltpu.PrefetchScalarGridSpec(
        num_scalar_prefetch=0,
        grid=(n_steps,),
        in_specs=[
            pl.BlockSpec((bt * T, 2 * N), lambda b: (b, 0)),   # spectrogram rows
            pl.BlockSpec((2 * N, 2 * N), lambda b: (0, 0)),    # fused IDFT*window
            pl.BlockSpec((1, C, hop), lambda b: (0, 0, 0)),    # 1/envelope
        ],
        out_specs=[
            pl.BlockSpec((bt, C, hop), lambda b: (b, 0, 0)),
            pl.BlockSpec((bt, C, hop), lambda b: (b, 0, 0)),
        ],
    )

    kern = functools.partial(_istft_kernel, b_tile=bt, n_frames=T,
                             n_fft=N, hop=hop)
    out_r, out_i = pl.pallas_call(
        kern,
        out_shape=out_shape,
        grid_spec=grid_spec,
        compiler_params=pltpu.CompilerParams(
            dimension_semantics=("parallel",),
            vmem_limit_bytes=48 * 1024 * 1024),
    )(xc, jnp.asarray(wc, jnp.bfloat16), jnp.asarray(einv))

    # flatten the folded buffer, center-trim, recombine complex
    y_r = out_r.reshape(B_pad, L_full)[:B, half:L_full - half]
    y_i = out_i.reshape(B_pad, L_full)[:B, half:L_full - half]
    wave = (y_r + 1j * y_i).astype(jnp.complex64)
    # TODO(synk): self.length / self.pad trimming is dead code (length=None).
    return wave.reshape(shape[:-2] + (L_out,))


def _reference_istft(x, n_fft, hop, win_length):
    """Pure NumPy reference matching torch.istft(onesided=False, center=True)."""
    shape = x.shape
    spec = np.asarray(x).reshape((-1,) + shape[-2:])     # (B, F, T)
    B, F, T = spec.shape
    N = n_fft
    hann = 0.5 * (1.0 - np.cos(2.0 * np.pi * np.arange(win_length) / win_length))
    lpad = (N - win_length) // 2
    wpad = np.zeros((N,))
    wpad[lpad:lpad + win_length] = hann
    frames = np.fft.ifft(spec, axis=1) * wpad[None, :, None]    # (B, N, T)
    L_full = N + hop * (T - 1)
    y = np.zeros((B, L_full), np.complex128)
    env = np.zeros((L_full,))
    for t in range(T):
        y[:, t * hop:t * hop + N] += frames[:, :, t]
        env[t * hop:t * hop + N] += wpad * wpad
    half = N // 2
    y = y[:, half:L_full - half] / env[half:L_full - half]
    return y.reshape(shape[:-2] + (y.shape[-1],))


if __name__ == "__main__":
    n_fft, hop_length, win_length = 16, 4, 16
    n_frames = 8
    key = jax.random.PRNGKey(0)
    k1, k2 = jax.random.split(key)
    xr = jax.random.normal(k1, (2, 3, n_fft, n_frames), dtype=jnp.float32)
    xi = jax.random.normal(k2, (2, 3, n_fft, n_frames), dtype=jnp.float32)
    x = (xr + 1j * xi).astype(jnp.complex64)             # (2, 3, 16, 8) complex

    out = complexi_istft(x, n_fft=n_fft, hop_length=hop_length,
                         win_length=win_length)
    out = jax.block_until_ready(out)

    ref = _reference_istft(x, n_fft, hop_length, win_length)
    assert out.shape == ref.shape, (out.shape, ref.shape)
    np.testing.assert_allclose(np.asarray(out), ref, rtol=2e-2, atol=2e-2)
    print("KERNEL_OK")
</pallas_src>

<mosaic_0001>
module attributes {stable_mosaic.version = 11 : i64} {
  func.func @_istft_kernel(%arg0: i32, %arg1: memref<24x32xbf16, #tpu.memory_space<vmem>>, %arg2: memref<32x32xbf16, #tpu.memory_space<vmem>>, %arg3: memref<1x11x4xf32, #tpu.memory_space<vmem>>, %arg4: memref<3x11x4xf32, #tpu.memory_space<vmem>>, %arg5: memref<3x11x4xf32, #tpu.memory_space<vmem>>) attributes {dimension_semantics = [#tpu.dimension_semantics<parallel>], iteration_bounds = array<i64: 2>, scalar_prefetch = 0 : i64, scratch_operands = 0 : i64, tpu.core_type = #tpu.core_type<tc>, window_params = [{transform_indices = @transform_0, window_bounds = array<i64: 24, 32>}, {pipeline_mode = #tpu.pipeline_mode<synchronous>, transform_indices = @transform_1, window_bounds = array<i64: 32, 32>}, {pipeline_mode = #tpu.pipeline_mode<synchronous>, transform_indices = @transform_2, window_bounds = array<i64: 1, 11, 4>}, {transform_indices = @transform_3, window_bounds = array<i64: 3, 11, 4>}, {transform_indices = @transform_4, window_bounds = array<i64: 3, 11, 4>}]} {
    %c0 = arith.constant 0 : index
    %c0_0 = arith.constant 0 : index
    %0 = vector.load %arg1[%c0, %c0_0] : memref<24x32xbf16, #tpu.memory_space<vmem>>, vector<24x32xbf16>
    %c0_1 = arith.constant 0 : index
    %c0_2 = arith.constant 0 : index
    %1 = vector.load %arg2[%c0_1, %c0_2] : memref<32x32xbf16, #tpu.memory_space<vmem>>, vector<32x32xbf16>
    %cst = arith.constant dense<0.000000e+00> : vector<24x32xf32>
    %2 = tpu.matmul %0, %1, %cst {dimension_numbers = #tpu.dot_dimension_numbers<[1], [0], [0], [1], [0, 0, 1, 1], [], []>} : vector<24x32xbf16>, vector<32x32xbf16>, vector<24x32xf32> -> vector<24x32xf32>
    %3 = vector.extract_strided_slice %2 {offsets = [0, 0], sizes = [24, 16], strides = [1, 1]} : vector<24x32xf32> to vector<24x16xf32>
    %4 = vector.shape_cast %3 : vector<24x16xf32> to vector<3x8x16xf32>
    %5 = vector.extract_strided_slice %2 {offsets = [0, 16], sizes = [24, 16], strides = [1, 1]} : vector<24x32xf32> to vector<24x16xf32>
    %6 = vector.shape_cast %5 : vector<24x16xf32> to vector<3x8x16xf32>
    %cst_3 = arith.constant 0.000000e+00 : f32
    %7 = vector.broadcast %cst_3 : f32 to vector<3x11x4xf32>
    %c0_4 = arith.constant 0 : index
    %c0_5 = arith.constant 0 : index
    %c0_6 = arith.constant 0 : index
    %8 = vector.load %arg4[%c0_4, %c0_5, %c0_6] : memref<3x11x4xf32, #tpu.memory_space<vmem>>, vector<3x11x4xf32>
    tpu.vector_store %arg4[%c0_4, %c0_5, %c0_6], %7 {strides = array<i32>} : memref<3x11x4xf32, #tpu.memory_space<vmem>>, vector<3x11x4xf32>,
    %cst_7 = arith.constant 0.000000e+00 : f32
    %9 = vector.broadcast %cst_7 : f32 to vector<3x11x4xf32>
    %c0_8 = arith.constant 0 : index
    %c0_9 = arith.constant 0 : index
    %c0_10 = arith.constant 0 : index
    %10 = vector.load %arg5[%c0_8, %c0_9, %c0_10] : memref<3x11x4xf32, #tpu.memory_space<vmem>>, vector<3x11x4xf32>
    tpu.vector_store %arg5[%c0_8, %c0_9, %c0_10], %9 {strides = array<i32>} : memref<3x11x4xf32, #tpu.memory_space<vmem>>, vector<3x11x4xf32>,
    %c0_11 = arith.constant 0 : index
    %c0_12 = arith.constant 0 : index
    %c0_13 = arith.constant 0 : index
    %11 = vector.load %arg4[%c0_11, %c0_12, %c0_13] : memref<3x11x4xf32, #tpu.memory_space<vmem>>, vector<3x8x4xf32>
    %12 = vector.extract_strided_slice %4 {offsets = [0, 0, 0], sizes = [3, 8, 4], strides = [1, 1, 1]} : vector<3x8x16xf32> to vector<3x8x4xf32>
    %13 = arith.addf %11, %12 : vector<3x8x4xf32>
    %c0_14 = arith.constant 0 : index
    %c0_15 = arith.constant 0 : index
    %c0_16 = arith.constant 0 : index
    %14 = vector.load %arg4[%c0_14, %c0_15, %c0_16] : memref<3x11x4xf32, #tpu.memory_space<vmem>>, vector<3x8x4xf32>
    tpu.vector_store %arg4[%c0_14, %c0_15, %c0_16], %13 {strides = array<i32>} : memref<3x11x4xf32, #tpu.memory_space<vmem>>, vector<3x8x4xf32>,
    %c0_17 = arith.constant 0 : index
    %c0_18 = arith.constant 0 : index
    %c0_19 = arith.constant 0 : index
    %15 = vector.load %arg5[%c0_17, %c0_18, %c0_19] : memref<3x11x4xf32, #tpu.memory_space<vmem>>, vector<3x8x4xf32>
    %16 = vector.extract_strided_slice %6 {offsets = [0, 0, 0], sizes = [3, 8, 4], strides = [1, 1, 1]} : vector<3x8x16xf32> to vector<3x8x4xf32>
    %17 = arith.addf %15, %16 : vector<3x8x4xf32>
    %c0_20 = arith.constant 0 : index
    %c0_21 = arith.constant 0 : index
    %c0_22 = arith.constant 0 : index
    %18 = vector.load %arg5[%c0_20, %c0_21, %c0_22] : memref<3x11x4xf32, #tpu.memory_space<vmem>>, vector<3x8x4xf32>
    tpu.vector_store %arg5[%c0_20, %c0_21, %c0_22], %17 {strides = array<i32>} : memref<3x11x4xf32, #tpu.memory_space<vmem>>, vector<3x8x4xf32>,
    %c0_23 = arith.constant 0 : index
    %c1 = arith.constant 1 : index
    %c0_24 = arith.constant 0 : index
    %19 = vector.load %arg4[%c0_23, %c1, %c0_24] : memref<3x11x4xf32, #tpu.memory_space<vmem>>, vector<3x8x4xf32>
    %20 = vector.extract_strided_slice %4 {offsets = [0, 0, 4], sizes = [3, 8, 4], strides = [1, 1, 1]} : vector<3x8x16xf32> to vector<3x8x4xf32>
    %21 = arith.addf %19, %20 : vector<3x8x4xf32>
    %c0_25 = arith.constant 0 : index
    %c1_26 = arith.constant 1 : index
    %c0_27 = arith.constant 0 : index
    %22 = vector.load %arg4[%c0_25, %c1_26, %c0_27] : memref<3x11x4xf32, #tpu.memory_space<vmem>>, vector<3x8x4xf32>
    tpu.vector_store %arg4[%c0_25, %c1_26, %c0_27], %21 {strides = array<i32>} : memref<3x11x4xf32, #tpu.memory_space<vmem>>, vector<3x8x4xf32>,
    %c0_28 = arith.constant 0 : index
    %c1_29 = arith.constant 1 : index
    %c0_30 = arith.constant 0 : index
    %23 = vector.load %arg5[%c0_28, %c1_29, %c0_30] : memref<3x11x4xf32, #tpu.memory_space<vmem>>, vector<3x8x4xf32>
    %24 = vector.extract_strided_slice %6 {offsets = [0, 0, 4], sizes = [3, 8, 4], strides = [1, 1, 1]} : vector<3x8x16xf32> to vector<3x8x4xf32>
    %25 = arith.addf %23, %24 : vector<3x8x4xf32>
    %c0_31 = arith.constant 0 : index
    %c1_32 = arith.constant 1 : index
    %c0_33 = arith.constant 0 : index
    %26 = vector.load %arg5[%c0_31, %c1_32, %c0_33] : memref<3x11x4xf32, #tpu.memory_space<vmem>>, vector<3x8x4xf32>
    tpu.vector_store %arg5[%c0_31, %c1_32, %c0_33], %25 {strides = array<i32>} : memref<3x11x4xf32, #tpu.memory_space<vmem>>, vector<3x8x4xf32>,
    %c0_34 = arith.constant 0 : index
    %c2 = arith.constant 2 : index
    %c0_35 = arith.constant 0 : index
    %27 = vector.load %arg4[%c0_34, %c2, %c0_35] : memref<3x11x4xf32, #tpu.memory_space<vmem>>, vector<3x8x4xf32>
    %28 = vector.extract_strided_slice %4 {offsets = [0, 0, 8], sizes = [3, 8, 4], strides = [1, 1, 1]} : vector<3x8x16xf32> to vector<3x8x4xf32>
    %29 = arith.addf %27, %28 : vector<3x8x4xf32>
    %c0_36 = arith.constant 0 : index
    %c2_37 = arith.constant 2 : index
    %c0_38 = arith.constant 0 : index
    %30 = vector.load %arg4[%c0_36, %c2_37, %c0_38] : memref<3x11x4xf32, #tpu.memory_space<vmem>>, vector<3x8x4xf32>
    tpu.vector_store %arg4[%c0_36, %c2_37, %c0_38], %29 {strides = array<i32>} : memref<3x11x4xf32, #tpu.memory_space<vmem>>, vector<3x8x4xf32>,
    %c0_39 = arith.constant 0 : index
    %c2_40 = arith.constant 2 : index
    %c0_41 = arith.constant 0 : index
    %31 = vector.load %arg5[%c0_39, %c2_40, %c0_41] : memref<3x11x4xf32, #tpu.memory_space<vmem>>, vector<3x8x4xf32>
    %32 = vector.extract_strided_slice %6 {offsets = [0, 0, 8], sizes = [3, 8, 4], strides = [1, 1, 1]} : vector<3x8x16xf32> to vector<3x8x4xf32>
    %33 = arith.addf %31, %32 : vector<3x8x4xf32>
    %c0_42 = arith.constant 0 : index
    %c2_43 = arith.constant 2 : index
    %c0_44 = arith.constant 0 : index
    %34 = vector.load %arg5[%c0_42, %c2_43, %c0_44] : memref<3x11x4xf32, #tpu.memory_space<vmem>>, vector<3x8x4xf32>
    tpu.vector_store %arg5[%c0_42, %c2_43, %c0_44], %33 {strides = array<i32>} : memref<3x11x4xf32, #tpu.memory_space<vmem>>, vector<3x8x4xf32>,
    %c0_45 = arith.constant 0 : index
    %c3 = arith.constant 3 : index
    %c0_46 = arith.constant 0 : index
    %35 = vector.load %arg4[%c0_45, %c3, %c0_46] : memref<3x11x4xf32, #tpu.memory_space<vmem>>, vector<3x8x4xf32>
    %36 = vector.extract_strided_slice %4 {offsets = [0, 0, 12], sizes = [3, 8, 4], strides = [1, 1, 1]} : vector<3x8x16xf32> to vector<3x8x4xf32>
    %37 = arith.addf %35, %36 : vector<3x8x4xf32>
    %c0_47 = arith.constant 0 : index
    %c3_48 = arith.constant 3 : index
    %c0_49 = arith.constant 0 : index
    %38 = vector.load %arg4[%c0_47, %c3_48, %c0_49] : memref<3x11x4xf32, #tpu.memory_space<vmem>>, vector<3x8x4xf32>
    tpu.vector_store %arg4[%c0_47, %c3_48, %c0_49], %37 {strides = array<i32>} : memref<3x11x4xf32, #tpu.memory_space<vmem>>, vector<3x8x4xf32>,
    %c0_50 = arith.constant 0 : index
    %c3_51 = arith.constant 3 : index
    %c0_52 = arith.constant 0 : index
    %39 = vector.load %arg5[%c0_50, %c3_51, %c0_52] : memref<3x11x4xf32, #tpu.memory_space<vmem>>, vector<3x8x4xf32>
    %40 = vector.extract_strided_slice %6 {offsets = [0, 0, 12], sizes = [3, 8, 4], strides = [1, 1, 1]} : vector<3x8x16xf32> to vector<3x8x4xf32>
    %41 = arith.addf %39, %40 : vector<3x8x4xf32>
    %c0_53 = arith.constant 0 : index
    %c3_54 = arith.constant 3 : index
    %c0_55 = arith.constant 0 : index
    %42 = vector.load %arg5[%c0_53, %c3_54, %c0_55] : memref<3x11x4xf32, #tpu.memory_space<vmem>>, vector<3x8x4xf32>
    tpu.vector_store %arg5[%c0_53, %c3_54, %c0_55], %41 {strides = array<i32>} : memref<3x11x4xf32, #tpu.memory_space<vmem>>, vector<3x8x4xf32>,
    %c0_56 = arith.constant 0 : index
    %c0_57 = arith.constant 0 : index
    %c0_58 = arith.constant 0 : index
    %43 = vector.load %arg3[%c0_56, %c0_57, %c0_58] : memref<1x11x4xf32, #tpu.memory_space<vmem>>, vector<1x11x4xf32>
    %c0_59 = arith.constant 0 : index
    %c0_60 = arith.constant 0 : index
    %c0_61 = arith.constant 0 : index
    %44 = vector.load %arg4[%c0_59, %c0_60, %c0_61] : memref<3x11x4xf32, #tpu.memory_space<vmem>>, vector<3x11x4xf32>
    %45 = vector.broadcast %43 : vector<1x11x4xf32> to vector<3x11x4xf32>
    %46 = arith.mulf %44, %45 : vector<3x11x4xf32>
    %c0_62 = arith.constant 0 : index
    %c0_63 = arith.constant 0 : index
    %c0_64 = arith.constant 0 : index
    %47 = vector.load %arg4[%c0_62, %c0_63, %c0_64] : memref<3x11x4xf32, #tpu.memory_space<vmem>>, vector<3x11x4xf32>
    tpu.vector_store %arg4[%c0_62, %c0_63, %c0_64], %46 {strides = array<i32>} : memref<3x11x4xf32, #tpu.memory_space<vmem>>, vector<3x11x4xf32>,
    %c0_65 = arith.constant 0 : index
    %c0_66 = arith.constant 0 : index
    %c0_67 = arith.constant 0 : index
    %48 = vector.load %arg5[%c0_65, %c0_66, %c0_67] : memref<3x11x4xf32, #tpu.memory_space<vmem>>, vector<3x11x4xf32>
    %49 = vector.broadcast %43 : vector<1x11x4xf32> to vector<3x11x4xf32>
    %50 = arith.mulf %48, %49 : vector<3x11x4xf32>
    %c0_68 = arith.constant 0 : index
    %c0_69 = arith.constant 0 : index
    %c0_70 = arith.constant 0 : index
    %51 = vector.load %arg5[%c0_68, %c0_69, %c0_70] : memref<3x11x4xf32, #tpu.memory_space<vmem>>, vector<3x11x4xf32>
    tpu.vector_store %arg5[%c0_68, %c0_69, %c0_70], %50 {strides = array<i32>} : memref<3x11x4xf32, #tpu.memory_space<vmem>>, vector<3x11x4xf32>,
    return
  }
  func.func @transform_0(%arg0: i32) -> (i32, i32) {
    %c0_i32 = arith.constant 0 : i32
    %c0_i32_0 = arith.constant 0 : i32
    return %arg0, %c0_i32 : i32, i32
  }
  func.func @transform_1(%arg0: i32) -> (i32, i32) {
    %c0_i32 = arith.constant 0 : i32
    %c0_i32_0 = arith.constant 0 : i32
    %c0_i32_1 = arith.constant 0 : i32
    return %c0_i32, %c0_i32_0 : i32, i32
  }
  func.func @transform_2(%arg0: i32) -> (i32, i32, i32) {
    %c0_i32 = arith.constant 0 : i32
    %c0_i32_0 = arith.constant 0 : i32
    %c0_i32_1 = arith.constant 0 : i32
    %c0_i32_2 = arith.constant 0 : i32
    return %c0_i32, %c0_i32_0, %c0_i32_1 : i32, i32, i32
  }
  func.func @transform_3(%arg0: i32) -> (i32, i32, i32) {
    %c0_i32 = arith.constant 0 : i32
    %c0_i32_0 = arith.constant 0 : i32
    %c0_i32_1 = arith.constant 0 : i32
    return %arg0, %c0_i32, %c0_i32_0 : i32, i32, i32
  }
  func.func @transform_4(%arg0: i32) -> (i32, i32, i32) {
    %c0_i32 = arith.constant 0 : i32
    %c0_i32_0 = arith.constant 0 : i32
    %c0_i32_1 = arith.constant 0 : i32
    return %arg0, %c0_i32, %c0_i32_0 : i32, i32, i32
  }
}

</mosaic_0001>

<bundles_post_ra>
// kernel: tpu_custom_call.1
= control target key start
LH: loop header
LB: loop body
LE: loop exit
PB: predicated region body
PF: predicated region fallthrough
CT: control target
= control target key end

     0   :  { %s679_s15 = smov 0   ;;  %s847_s0 = inlined_call_operand.vmem [shape: bf16[48,32], index: 0, kind: input, shape index: {}]   ;;  %s848_s1 = inlined_call_operand.vmem [shape: bf16[32,32], index: 1, kind: input, shape index: {}]   ;;  %s849_s2 = inlined_call_operand.vmem [shape: f32[1,11,4], index: 2, kind: input, shape index: {}]   ;;  %s850_s3 = inlined_call_operand.vmem [shape: f32[6,11,4], index: 3, kind: output, shape index: {0}]   ;;  %s851_s4 = inlined_call_operand.vmem [shape: f32[6,11,4], index: 4, kind: output, shape index: {1}]  }
   0x1 LB: > { %s586_s16 = sadd.s32 4294967295, %s644_s15   ;;  %p590_p0 = scmp.ge.s32.totalorder %s644_s15, 1  ;;  %s644_s15 = sphi %s679_s15, %s15_s15  }
   0x2   : > { %p166_p1 = scmp.lt.s32.totalorder %s644_s15, 3 }
   0x4   : > { %p167_p2 = pnand %p590_p0, %p166_p1 }
   0x5   : > { %s199_s19 = smul.u32 (!%p167_p2), 3, %s586_s16  ;;  %s647_s7 = smov (!%p167_p2), 112  }
   0x6   : > { %170 = sbr.rel (%p167_p2) target bundleno = 384 (0x180), region = 32  ;;  %s648_s8 = smov (!%p167_p2), 124  }
   0x7   : > { %p200_p3 = scmp.lt.s32.totalorder (!%p167_p2), %s199_s19, 5  ;;  %s649_s9 = smov (!%p167_p2), 108  }
   0x8   : > { %s650_s10 = smov (!%p167_p2), 120   ;;  %s651_s11 = smov (!%p167_p2), 104  }
   0x9   : > { %s652_s12 = smov (!%p167_p2), 116   ;;  %s653_s13 = smov (!%p167_p2), 100  }
   0xb   : > { %v634_v0 = vld [vmem:[%s848_s1 + $0x8] sm:$0xff]   ;;  %v635_v1 = vld [vmem:[%s848_s1] sm:$0xff]   ;;  %s853_s19 = smov (!%p200_p3, %s199_s19), 5  ;;  %vm247_vm0 = vcmask 261120   ;;  %vm302_vm1 = vcmask 31744   ;;  %v646_v4 = vmov 0.0  }
   0xc   : > { %610 = vmatprep.subr.bf16.mxu0 %v634_v0  ;;  %s591_s22 = sshll.u32 %s853_s19, 2  ;;  %s604_s26 = sshll.u32 %s853_s19, 4  ;;  %vm304_vm2 = vcmask 26624  }
   0xd   : > { %611 = vmatpush3.bf16.msra.mxu0 %v634_v0  ;;  %s203_s25 = scalar_lea.vmem %s847_s0, %s591_s22  ;;  %s699_s29 = scalar_lea.vmem %s850_s3, %s604_s26 }
   0xe   : > { %612 = vmatprep.subr.bf16.mxu0 %v635_v1  ;;  %v636_v2 = vld [vmem:[%s203_s25] sm:$0xff]   ;;  %v637_v3 = vld [vmem:[%s203_s25 + $0x8] ss:$0 sps:$4 sm:$0xff]   ;;  %s704_s6 = scalar_lea.vmem %s851_s4, %s604_s26  ;;  %308 = vst.msk [vmem:[%s699_s29 + $0x20] sm:$0xff] %vm302_vm1, %v646_v4  ;;  %303 = vst.msk [vmem:[%s699_s29] sm:$0xff] %vm302_vm1, %v646_v4 }
   0xf   : > { %614 = vmatprep.mubr.msk.bf16.mxu0 %vm247_vm0, %v636_v2  ;;  %306 = vst.msk [vmem:[%s699_s29 + $0x10] sm:$0xff] %vm302_vm1, %v646_v4  ;;  %310 = vst.msk [vmem:[%s704_s6] sm:$0xff] %vm302_vm1, %v646_v4 }
  0x10   : > { %312 = vst.msk [vmem:[%s704_s6 + $0x10] sm:$0xff] %vm302_vm1, %v646_v4  ;;  %314 = vst.msk [vmem:[%s704_s6 + $0x20] sm:$0xff] %vm302_vm1, %v646_v4 }
  0x11   : > { %613 = vmatpush3.bf16.msra.mxu0 %v635_v1  ;;  %309 = vst.msk [vmem:[%s699_s29 + $0x28] sm:$0x7] %vm304_vm2, %v646_v4  ;;  %305 = vst.msk [vmem:[%s699_s29 + $0x8] sm:$0x7] %vm304_vm2, %v646_v4 }
  0x12   : > { %307 = vst.msk [vmem:[%s699_s29 + $0x18] sm:$0x7] %vm304_vm2, %v646_v4  ;;  %311 = vst.msk [vmem:[%s704_s6 + $0x8] sm:$0x7] %vm304_vm2, %v646_v4 }
  0x13   : > { %313 = vst.msk [vmem:[%s704_s6 + $0x18] sm:$0x7] %vm304_vm2, %v646_v4  ;;  %315 = vst.msk [vmem:[%s704_s6 + $0x28] sm:$0x7] %vm304_vm2, %v646_v4 }
  0x14   : > { %615 = vmatmul.mubr.msk.bf16.vlgmr.msra.gmra.mxu0 %vm247_vm0, %v637_v3 }
  0x15   : > { %v318_v5 = vld [vmem:[%s699_s29 + $0x20] sm:$0xff] }
  0x16   : > { %v316_v7 = vld [vmem:[%s699_s29] sm:$0xff]  ;;  %v317_v12 = vld [vmem:[%s699_s29 + $0x10] sm:$0xff] }
  0x17   : > { %v327_v15 = vld [vmem:[%s704_s6 + $0x20] sm:$0xff]  ;;  %v326_v27 = vld [vmem:[%s704_s6 + $0x10] sm:$0xff] }
  0x18   : > { %v325_v17 = vld [vmem:[%s704_s6] sm:$0xff] }
  0xd4   : > { %v616_v6 = vpop.f32.mrf.mxu0 }
  0xd5   : > { %v321_v8 = vadd.f32 %v616_v6, %v318_v5  ;;  %335 = vrot.lane.b32.xlu1 %v616_v6, %s647_s7  ;;  %v454_v5 = vld [vmem:[%s849_s2] sm:$0xff] }
  0xd6   : > { %v288_v9 = vpop.f32.mrf.mxu0 }
  0xd7   : > { %324 = vst.msk [vmem:[%s699_s29 + $0x20] sm:$0xff] %vm302_vm1, %v321_v8  ;;  %v319_v10 = vadd.f32 %v316_v7, %v288_v9  ;;  %331 = vrot.lane.b32.xlu0 %v288_v9, %s647_s7 }
  0xd8   : > { %v617_v11 = vpop.f32.mrf.mxu0 }
  0xd9   : > { %322 = vst.msk [vmem:[%s699_s29] sm:$0xff] %vm302_vm1, %v319_v10  ;;  %353 = vrot.lane.b32.xlu1 %v616_v6, %s648_s8 }
  0xda   : > { %v291_v13 = vpop.f32.mrf.mxu0 }
  0xdb   : > { %v320_v14 = vadd.f32 %v317_v12, %v291_v13  ;;  %367 = vrot.lane.b32.xlu0 %v288_v9, %s649_s9 }
  0xdd   : > { %323 = vst.msk [vmem:[%s699_s29 + $0x10] sm:$0xff] %vm302_vm1, %v320_v14  ;;  %349 = vrot.lane.b32.xlu1 %v288_v9, %s648_s8 }
  0xde   : > { %v348_v22 = vld [vmem:[%s699_s29 + $0x21] sm:$0xff] }
  0xdf   : > { %333 = vrot.lane.b32.xlu0 %v291_v13, %s647_s7 }
  0xe0   : > { %v346_v26 = vld [vmem:[%s699_s29 + $0x1] sm:$0xff] }
  0xe1   : > { %385 = vrot.lane.b32.xlu1 %v288_v9, %s650_s10 }
  0xe3   : > { %371 = vrot.lane.b32.xlu0 %v616_v6, %s649_s9 }
  0xe4   : > { %v347_v40 = vld [vmem:[%s699_s29 + $0x11] sm:$0xff] }
  0xe5   : > { %369 = vrot.lane.b32.xlu1 %v291_v13, %s649_s9 }
  0xe7   : > { %351 = vrot.lane.b32.xlu0 %v291_v13, %s648_s8 }
  0xe9   : > { %389 = vrot.lane.b32.xlu1 %v616_v6, %s650_s10 }
  0xeb   : > { %403 = vrot.lane.b32.xlu0 %v288_v9, %s651_s11 }
  0xed   : > { %405 = vrot.lane.b32.xlu1 %v291_v13, %s651_s11 }
  0xef   : > { %407 = vrot.lane.b32.xlu0 %v616_v6, %s651_s11 }
  0xf1   : > { %421 = vrot.lane.b32.xlu1 %v288_v9, %s652_s12 }
  0xf3   : > { %387 = vrot.lane.b32.xlu0 %v291_v13, %s650_s10 }
  0xf5   : > { %425 = vrot.lane.b32.xlu1 %v616_v6, %s652_s12 }
  0xf7   : > { %439 = vrot.lane.b32.xlu0 %v288_v9, %s653_s13 }
  0xf9   : > { %441 = vrot.lane.b32.xlu1 %v291_v13, %s653_s13 }
  0xfb   : > { %423 = vrot.lane.b32.xlu0 %v291_v13, %s652_s12 }
  0xff   : > { %443 = vrot.lane.b32.xlu0 %v616_v6, %s653_s13  ;;  %v455_v6 = vld [vmem:[%s849_s2 + $0x8] sm:$0x7] }
 0x147   : > { %v336_v16 = vpop.permute.xlu1 %335 }
 0x148   : > { %v342_v18 = vadd.f32 %v336_v16, %v327_v15 }
 0x149   : > { %v332_v19 = vpop.permute.xlu0 %331 }
 0x14a   : > { %345 = vst.msk [vmem:[%s704_s6 + $0x20] sm:$0xff] %vm302_vm1, %v342_v18  ;;  %v340_v20 = vadd.f32 %v332_v19, %v325_v17 }
 0x14b   : > { %v354_v21 = vpop.permute.xlu1 %353 }
 0x14c   : > { %343 = vst.msk [vmem:[%s704_s6] sm:$0xff] %vm302_vm1, %v340_v20  ;;  %v360_v23 = vadd.f32 %v354_v21, %v348_v22 }
 0x14d   : > { %v368_v24 = vpop.permute.xlu0 %367 }
 0x14e   : > { %363 = vst.msk [vmem:[%s699_s29 + $0x21] sm:$0xff] %vm302_vm1, %v360_v23 }
 0x14f   : > { %v350_v25 = vpop.permute.xlu1 %349 }
 0x150   : > { %v358_v28 = vadd.f32 %v350_v25, %v346_v26 }
 0x151   : > { %v334_v29 = vpop.permute.xlu0 %333  ;;  %v366_v34 = vld [vmem:[%s704_s6 + $0x21] sm:$0xff] }
 0x152   : > { %361 = vst.msk [vmem:[%s699_s29 + $0x1] sm:$0xff] %vm302_vm1, %v358_v28  ;;  %v341_v30 = vadd.f32 %v334_v29, %v326_v27 }
 0x153   : > { %v364_v31 = vld [vmem:[%s704_s6 + $0x1] sm:$0xff]  ;;  %v386_v32 = vpop.permute.xlu1 %385 }
 0x154   : > { %v376_v33 = vadd.f32 %v368_v24, %v364_v31  ;;  %344 = vst.msk [vmem:[%s704_s6 + $0x10] sm:$0xff] %vm302_vm1, %v341_v30 }
 0x155   : > { %v372_v35 = vpop.permute.xlu0 %371  ;;  %v384_v44 = vld [vmem:[%s699_s29 + $0x22] sm:$0xff] }
 0x156   : > { %379 = vst.msk [vmem:[%s704_s6 + $0x1] sm:$0xff] %vm302_vm1, %v376_v33  ;;  %v378_v36 = vadd.f32 %v372_v35, %v366_v34 }
 0x157   : > { %v370_v37 = vpop.permute.xlu1 %369 }
 0x158   : > { %381 = vst.msk [vmem:[%s704_s6 + $0x21] sm:$0xff] %vm302_vm1, %v378_v36 }
 0x159   : > { %v382_v38 = vld [vmem:[%s699_s29 + $0x2] sm:$0xff]  ;;  %v352_v39 = vpop.permute.xlu0 %351 }
 0x15a   : > { %v394_v41 = vadd.f32 %v386_v32, %v382_v38  ;;  %v359_v42 = vadd.f32 %v352_v39, %v347_v40 }
 0x15b   : > { %v365_v43 = vld [vmem:[%s704_s6 + $0x11] sm:$0xff]  ;;  %v390_v45 = vpop.permute.xlu1 %389 }
 0x15c   : > { %397 = vst.msk [vmem:[%s699_s29 + $0x2] sm:$0xff] %vm302_vm1, %v394_v41  ;;  %v377_v46 = vadd.f32 %v370_v37, %v365_v43  ;;  %362 = vst.msk [vmem:[%s699_s29 + $0x11] sm:$0xff] %vm302_vm1, %v359_v42  ;;  %v396_v47 = vadd.f32 %v390_v45, %v384_v44 }
 0x15d   : > { %v400_v48 = vld [vmem:[%s704_s6 + $0x2] sm:$0xff]  ;;  %v404_v49 = vpop.permute.xlu0 %403 }
 0x15e   : > { %380 = vst.msk [vmem:[%s704_s6 + $0x11] sm:$0xff] %vm302_vm1, %v377_v46  ;;  %399 = vst.msk [vmem:[%s699_s29 + $0x22] sm:$0xff] %vm302_vm1, %v396_v47  ;;  %v412_v50 = vadd.f32 %v404_v49, %v400_v48 }
 0x15f   : > { %v406_v51 = vpop.permute.xlu1 %405  ;;  %v402_v52 = vld [vmem:[%s704_s6 + $0x22] sm:$0xff] }
 0x160   : > { %415 = vst.msk [vmem:[%s704_s6 + $0x2] sm:$0xff] %vm302_vm1, %v412_v50 }
 0x161   : > { %v408_v53 = vpop.permute.xlu0 %407 }
 0x162   : > { %v414_v54 = vadd.f32 %v408_v53, %v402_v52 }
 0x163   : > { %v418_v55 = vld [vmem:[%s699_s29 + $0x3] sm:$0xff]  ;;  %v422_v56 = vpop.permute.xlu1 %421  ;;  %v383_v60 = vld [vmem:[%s699_s29 + $0x12] sm:$0xff] }
 0x164   : > { %417 = vst.msk [vmem:[%s704_s6 + $0x22] sm:$0xff] %vm302_vm1, %v414_v54  ;;  %v430_v57 = vadd.f32 %v422_v56, %v418_v55 }
 0x165   : > { %v401_v58 = vld [vmem:[%s704_s6 + $0x12] sm:$0xff]  ;;  %v388_v59 = vpop.permute.xlu0 %387  ;;  %v420_v63 = vld [vmem:[%s699_s29 + $0x23] sm:$0xff] }
 0x166   : > { %v413_v61 = vadd.f32 %v406_v51, %v401_v58  ;;  %433 = vst.msk [vmem:[%s699_s29 + $0x3] sm:$0xff] %vm302_vm1, %v430_v57  ;;  %v395_v62 = vadd.f32 %v388_v59, %v383_v60 }
 0x167   : > { %v426_v0 = vpop.permute.xlu1 %425  ;;  %v436_v2 = vld [vmem:[%s704_s6 + $0x3] sm:$0xff] }
 0x168   : > { %416 = vst.msk [vmem:[%s704_s6 + $0x12] sm:$0xff] %vm302_vm1, %v413_v61  ;;  %398 = vst.msk [vmem:[%s699_s29 + $0x12] sm:$0xff] %vm302_vm1, %v395_v62  ;;  %v432_v1 = vadd.f32 %v426_v0, %v420_v63 }
 0x169   : > { %v440_v3 = vpop.permute.xlu0 %439 }
 0x16a   : > { %435 = vst.msk [vmem:[%s699_s29 + $0x23] sm:$0xff] %vm302_vm1, %v432_v1  ;;  %v448_v4 = vadd.f32 %v440_v3, %v436_v2 }
 0x16b   : > { %v442_v12 = vpop.permute.xlu1 %441  ;;  %v438_v19 = vld [vmem:[%s704_s6 + $0x23] sm:$0xff] }
 0x16c   : > { %451 = vst.msk [vmem:[%s704_s6 + $0x3] sm:$0xff] %vm302_vm1, %v448_v4 }
 0x16d   : > { %v456_v7 = vld [vmem:[%s699_s29] sm:$0xff]  ;;  %v457_v8 = vld [vmem:[%s699_s29 + $0x8] sm:$0x7]  ;;  %v424_v9 = vpop.permute.xlu0 %423 }
 0x16e   : > { %v462_v10 = vmul.f32 %v456_v7, %v454_v5  ;;  %v463_v11 = vmul.f32 %v457_v8, %v455_v6 }
 0x16f   : > { %v437_v13 = vld [vmem:[%s704_s6 + $0x13] sm:$0xff] }
 0x170   : > { %v419_v14 = vld [vmem:[%s699_s29 + $0x13] sm:$0xff]  ;;  %468 = vst.msk [vmem:[%s699_s29] sm:$0xff] %vm302_vm1, %v462_v10  ;;  %v449_v15 = vadd.f32 %v442_v12, %v437_v13 }
 0x171   : > { %469 = vst.msk [vmem:[%s699_s29 + $0x8] sm:$0x7] %vm304_vm2, %v463_v11  ;;  %v431_v16 = vadd.f32 %v424_v9, %v419_v14  ;;  %v460_v17 = vld [vmem:[%s699_s29 + $0x20] sm:$0xff]  ;;  %v461_v18 = vld [vmem:[%s699_s29 + $0x28] sm:$0x7]  ;;  %v444_v20 = vpop.permute.xlu0 %443 }
 0x172   : > { %v466_v21 = vmul.f32 %v460_v17, %v454_v5  ;;  %v467_v22 = vmul.f32 %v461_v18, %v455_v6  ;;  %452 = vst.msk [vmem:[%s704_s6 + $0x13] sm:$0xff] %vm302_vm1, %v449_v15  ;;  %v450_v23 = vadd.f32 %v444_v20, %v438_v19 }
 0x173   : > { %434 = vst.msk [vmem:[%s699_s29 + $0x13] sm:$0xff] %vm302_vm1, %v431_v16  ;;  %v474_v24 = vld [vmem:[%s704_s6] sm:$0xff]  ;;  %v475_v25 = vld [vmem:[%s704_s6 + $0x8] sm:$0x7] }
 0x174   : > { %472 = vst.msk [vmem:[%s699_s29 + $0x20] sm:$0xff] %vm302_vm1, %v466_v21  ;;  %v480_v26 = vmul.f32 %v474_v24, %v454_v5  ;;  %v481_v27 = vmul.f32 %v475_v25, %v455_v6  ;;  %453 = vst.msk [vmem:[%s704_s6 + $0x23] sm:$0xff] %vm302_vm1, %v450_v23 }
 0x175   : > { %473 = vst.msk [vmem:[%s699_s29 + $0x28] sm:$0x7] %vm304_vm2, %v467_v22 }
 0x176   : > { %486 = vst.msk [vmem:[%s704_s6] sm:$0xff] %vm302_vm1, %v480_v26 }
 0x177   : > { %487 = vst.msk [vmem:[%s704_s6 + $0x8] sm:$0x7] %vm304_vm2, %v481_v27 }
 0x179   : > { %v476_v28 = vld [vmem:[%s704_s6 + $0x10] sm:$0xff]  ;;  %v477_v29 = vld [vmem:[%s704_s6 + $0x18] sm:$0x7] }
 0x17a   : > { %v458_v30 = vld [vmem:[%s699_s29 + $0x10] sm:$0xff]  ;;  %v482_v31 = vmul.f32 %v476_v28, %v454_v5  ;;  %v483_v32 = vmul.f32 %v477_v29, %v455_v6  ;;  %v459_v33 = vld [vmem:[%s699_s29 + $0x18] sm:$0x7] }
 0x17b   : > { %v464_v34 = vmul.f32 %v458_v30, %v454_v5  ;;  %v465_v35 = vmul.f32 %v459_v33, %v455_v6  ;;  %v478_v36 = vld [vmem:[%s704_s6 + $0x20] sm:$0xff]  ;;  %v479_v37 = vld [vmem:[%s704_s6 + $0x28] sm:$0x7] }
 0x17c   : > { %488 = vst.msk [vmem:[%s704_s6 + $0x10] sm:$0xff] %vm302_vm1, %v482_v31  ;;  %v484_v38 = vmul.f32 %v478_v36, %v454_v5  ;;  %v485_v39 = vmul.f32 %v479_v37, %v455_v6 }
 0x17d   : > { %489 = vst.msk [vmem:[%s704_s6 + $0x18] sm:$0x7] %vm304_vm2, %v483_v32  ;;  %471 = vst.msk [vmem:[%s699_s29 + $0x18] sm:$0x7] %vm304_vm2, %v465_v35 }
 0x17e   : > { %470 = vst.msk [vmem:[%s699_s29 + $0x10] sm:$0xff] %vm302_vm1, %v464_v34  ;;  %490 = vst.msk [vmem:[%s704_s6 + $0x20] sm:$0xff] %vm302_vm1, %v484_v38 }
 0x17f   : > { %491 = vst.msk [vmem:[%s704_s6 + $0x28] sm:$0x7] %vm304_vm2, %v485_v39 }
 0x180 PF: > { %s15_s15 = sadd.s32 1, %s644_s15  }
 0x181   : > { %p12_p4 = scmp.ge.s32.totalorder %s15_s15, 4  }
 0x183   :  { %14 = sbr.rel (!%p12_p4) target bundleno = 1 (0x1), region = 74 }

</bundles_post_ra>
